<compile_context>
chip_gen: v7x
topology: tpu7x:2x2x1
jax: 0.10.0
libtpu: 0.0.40
codegen_flags: <defaults>
</compile_context>

<pallas_src>
import functools
import numpy as np
import jax
import jax.numpy as jnp
from jax.experimental import pallas as pl
from jax.experimental.pallas import tpu as pltpu

LANE = 128      # minimum Cout tile (lane width)
TM_N128 = 256   # output-row tile when the Cout tile is 128
TM_N256 = 128   # output-row tile when the Cout tile is 256 (keeps acc <= 128 KiB)


def _rup(x, m):
    return ((x + m - 1) // m) * m


@functools.lru_cache(maxsize=1)
def _vmem_limit_bytes():
    """Per-generation scoped-VMEM limit (None -> keep the compiler default)."""
    try:
        kind = jax.devices()[0].device_kind.lower()
    except Exception:
        return None
    if "v5" in kind or "v6" in kind:
        return 100 * 1024 * 1024      # 128 MiB physical VMEM on v5e/v5p/v6e
    if "v7" in kind or "7x" in kind:
        return 48 * 1024 * 1024       # 64 MiB physical per TensorCore on v7x
    return None


# ---------------------------------------------------------------------------
# Pallas kernels
# ---------------------------------------------------------------------------
def _conv_mm_kernel(a_ref, w_ref, b_ref, *rest, shifts, tm, act, has_res):
    """Fused conv(+BN bias)(+residual)(+ReLU) as a tap-shifted matmul.

    a_ref : (RA, Cin)    bf16  flattened zero-padded input, resident in VMEM
    w_ref : (T, Cin, TN) bf16  per-tap weight slices for one Cout tile
                                (BN scale already folded into the weights)
    b_ref : (1, TN)      f32   folded BN bias (+ conv bias)
    rest  : [res_ref,] o_ref
    grid  : (Cout tiles, row tiles) -- row tile innermost so the weight slab is
            fetched once per Cout tile.
    """
    if has_res:
        res_ref, o_ref = rest
    else:
        (o_ref,) = rest
    base = pl.program_id(1) * tm            # row-tile index (inner grid axis)
    acc = jnp.dot(a_ref[pl.ds(base + shifts[0], tm), :], w_ref[0],
                  preferred_element_type=jnp.float32)
    for t in range(1, len(shifts)):
        acc = acc + jnp.dot(a_ref[pl.ds(base + shifts[t], tm), :], w_ref[t],
                            preferred_element_type=jnp.float32)
    out = acc + b_ref[...]
    if has_res:
        out = out + res_ref[...].astype(jnp.float32)
    if act:
        out = jnp.maximum(out, 0.0)
    o_ref[...] = out.astype(o_ref.dtype)


def _maxpool_kernel(a_ref, o_ref, *, shifts, tm):
    base = pl.program_id(1) * tm            # row-tile index (inner grid axis)
    acc = a_ref[pl.ds(base + shifts[0], tm), :]
    for sh in shifts[1:]:
        acc = jnp.maximum(acc, a_ref[pl.ds(base + sh, tm), :])
    o_ref[...] = acc


def _gap_kernel(x_ref, o_ref):
    o_ref[...] = jnp.mean(x_ref[...].astype(jnp.float32), axis=1, keepdims=True)


# ---------------------------------------------------------------------------
# Pallas wrappers
# ---------------------------------------------------------------------------
@functools.partial(jax.jit, static_argnames=("shifts", "act", "out_rows"))
def _conv_matmul(A, W, bias, residual, *, shifts, act, out_rows):
    """A: (rows, Cin) bf16, W: (taps, Cin, Np) bf16, bias: (1, Np) f32."""
    RA, cin = A.shape
    T, _, Np = W.shape
    TN = 256 if Np % 256 == 0 else 128       # wider Cout tile fills v6e/v7x MXU
    tm_cap = TM_N256 if TN == 256 else TM_N128
    tm = min(tm_cap, _rup(out_rows, 8))
    gm = int(pl.cdiv(out_rows, tm))
    gn = Np // TN
    need_rows = _rup(gm * tm + max(shifts), 8)
    if RA < need_rows:                       # small tail pad (no k^2 duplication)
        A = jnp.pad(A, ((0, need_rows - RA), (0, 0)))
    in_specs = [
        pl.BlockSpec((A.shape[0], cin), lambda n, m: (0, 0)),   # input resident
        pl.BlockSpec((T, cin, TN), lambda n, m: (0, 0, n)),     # fetched once/n
        pl.BlockSpec((1, TN), lambda n, m: (0, n)),
    ]
    args = [A, W, bias]
    has_res = residual is not None
    if has_res:
        if residual.shape[0] < gm * tm:
            residual = jnp.pad(residual, ((0, gm * tm - residual.shape[0]), (0, 0)))
        in_specs.append(pl.BlockSpec((tm, TN), lambda n, m: (m, n)))
        args.append(residual)
    out = pl.pallas_call(
        functools.partial(_conv_mm_kernel, shifts=shifts, tm=tm,
                          act=act, has_res=has_res),
        out_shape=jax.ShapeDtypeStruct((gm * tm, Np), jnp.bfloat16),
        grid=(gn, gm),                        # Cout tile outer, row tile inner
        in_specs=in_specs,
        out_specs=pl.BlockSpec((tm, TN), lambda n, m: (m, n)),
        compiler_params=pltpu.CompilerParams(
            dimension_semantics=("parallel", "parallel"),
            vmem_limit_bytes=_vmem_limit_bytes()),
    )(*args)
    return out


def _run_conv_im2col(x, p):
    """Strided im2col conv (stem): gather the k*k taps at the output stride in
    the wrapper and run a single dense matmul over only the kept positions."""
    B, H, W, C = x.shape
    k, s, pad, d = p["k"], p["stride"], p["pad"], p["dil"]
    Np = p["w"].shape[-1]
    Ho = (H + 2 * pad - d * (k - 1) - 1) // s + 1
    Wo = (W + 2 * pad - d * (k - 1) - 1) // s + 1
    xp = jnp.pad(x, ((0, 0), (pad, pad), (pad, pad), (0, 0)))
    cols = []
    for i in range(k):
        for j in range(k):
            cols.append(xp[:, i * d: i * d + s * (Ho - 1) + 1: s,
                              j * d: j * d + s * (Wo - 1) + 1: s, :])
    A = jnp.concatenate(cols, axis=-1).reshape(B * Ho * Wo, k * k * C)
    Kp = p["w"].shape[1]
    if Kp > k * k * C:
        A = jnp.pad(A, ((0, 0), (0, Kp - k * k * C)))
    M = B * Ho * Wo
    out = _conv_matmul(A, p["w"], p["bias"], None,
                       shifts=(0,), act=bool(p["act"]), out_rows=M)
    return out[:M].reshape(B, Ho, Wo, Np)


def run_conv(x, p, residual=None):
    """x: (B, H, W, Cin_pad) bf16 NHWC -> (B, Ho, Wo, Cout_pad) bf16."""
    if p.get("fold_taps"):
        assert residual is None
        return _run_conv_im2col(x, p)
    B, H, W, C = x.shape
    k, s, pad, d = p["k"], p["stride"], p["pad"], p["dil"]
    Np = p["w"].shape[-1]
    act = bool(p["act"]) or (residual is not None)   # residual path: ReLU(out + sc)
    if k == 1:
        if s > 1:
            x = x[:, ::s, ::s, :]
        Ho, Wo = x.shape[1], x.shape[2]
        M = B * Ho * Wo
        A = x.reshape(M, C)
        res = None if residual is None else residual.reshape(M, Np)
        out = _conv_matmul(A, p["w"], p["bias"], res,
                           shifts=(0,), act=act, out_rows=M)
        return out[:M].reshape(B, Ho, Wo, Np)
    # k > 1: stride-1 conv over the zero-padded grid via tap shifts, then crop.
    # TODO(synk): strided / large-pad k>1 convs recompute extra rows (cropped).
    assert residual is None
    Hp, Wp = H + 2 * pad, W + 2 * pad
    Ho = (H + 2 * pad - d * (k - 1) - 1) // s + 1
    Wo = (W + 2 * pad - d * (k - 1) - 1) // s + 1
    xp = jnp.pad(x, ((0, 0), (pad, pad), (pad, pad), (0, 0)))
    A = xp.reshape(B * Hp * Wp, C)
    shifts = tuple(i * d * Wp + j * d for i in range(k) for j in range(k))
    M = B * Hp * Wp
    out = _conv_matmul(A, p["w"], p["bias"], None,
                       shifts=shifts, act=act, out_rows=M)
    out = out[:M].reshape(B, Hp, Wp, Np)
    return out[:, : s * (Ho - 1) + 1 : s, : s * (Wo - 1) + 1 : s, :]


@jax.jit
def maxpool_3x3_s2_p1(x):
    # Stem activations are post-ReLU (>= 0) and padded channels are exactly 0,
    # so zero padding is equivalent to -inf padding for this max pool.
    B, H, W, C = x.shape
    k, s, pad = 3, 2, 1
    Hp, Wp = H + 2 * pad, W + 2 * pad
    Ho = (H + 2 * pad - (k - 1) - 1) // s + 1
    Wo = (W + 2 * pad - (k - 1) - 1) // s + 1
    xp = jnp.pad(x, ((0, 0), (pad, pad), (pad, pad), (0, 0)))
    M = B * Hp * Wp
    A = xp.reshape(M, C)
    shifts = tuple(i * Wp + j for i in range(k) for j in range(k))
    tm = min(TM_N128, _rup(M, 8))
    gm = int(pl.cdiv(M, tm))
    gn = C // LANE
    need_rows = _rup(gm * tm + max(shifts), 8)
    if A.shape[0] < need_rows:
        A = jnp.pad(A, ((0, need_rows - A.shape[0]), (0, 0)))
    out = pl.pallas_call(
        functools.partial(_maxpool_kernel, shifts=shifts, tm=tm),
        out_shape=jax.ShapeDtypeStruct((gm * tm, C), x.dtype),
        grid=(gn, gm),                        # channel tile outer, row tile inner
        in_specs=[pl.BlockSpec((A.shape[0], LANE), lambda n, m: (0, n))],
        out_specs=pl.BlockSpec((tm, LANE), lambda n, m: (m, n)),
        compiler_params=pltpu.CompilerParams(
            dimension_semantics=("parallel", "parallel"),
            vmem_limit_bytes=_vmem_limit_bytes()),
    )(A)
    out = out[:M].reshape(B, Hp, Wp, C)
    return out[:, : s * (Ho - 1) + 1 : s, : s * (Wo - 1) + 1 : s, :]


@jax.jit
def global_avg_pool(x):
    B, H, W, C = x.shape
    x2 = x.reshape(B, H * W, C)
    out = pl.pallas_call(
        _gap_kernel,
        out_shape=jax.ShapeDtypeStruct((B, 1, C), jnp.float32),
        grid=(B,),
        in_specs=[pl.BlockSpec((1, H * W, C), lambda b: (b, 0, 0))],
        out_specs=pl.BlockSpec((1, 1, C), lambda b: (b, 0, 0)),
        compiler_params=pltpu.CompilerParams(
            dimension_semantics=("parallel",),
            vmem_limit_bytes=_vmem_limit_bytes()),
    )(x2)
    return out.reshape(B, 1, 1, C).astype(x.dtype)


# ---------------------------------------------------------------------------
# Deterministic parameter construction (mirrors the PyTorch module __init__)
# ---------------------------------------------------------------------------
class KeyGen:
    def __init__(self, seed):
        self._key = jax.random.PRNGKey(seed)

    def __call__(self):
        self._key, sub = jax.random.split(self._key)
        return sub


def _pad_weight(w, cin_segments, cout_p):
    # w: (taps, cin_real_total, cout_real) -> (taps, cin_padded_total, cout_p)
    _, _, cout = w.shape
    parts, off = [], 0
    for real, padded in cin_segments:
        seg = w[:, off:off + real, :]
        if padded > real:
            seg = jnp.pad(seg, ((0, 0), (0, padded - real), (0, 0)))
        parts.append(seg)
        off += real
    wp = parts[0] if len(parts) == 1 else jnp.concatenate(parts, axis=1)
    if cout_p > cout:
        wp = jnp.pad(wp, ((0, 0), (0, 0), (0, cout_p - cout)))
    return wp


def conv_params(rng, cin, cout, k, stride=1, pad=0, dil=1, act=True,
                conv_bias=True, has_bn=True, cin_segments=None, fold_taps=False):
    cout_p = _rup(cout, LANE)
    fan_in = k * k * cin
    w = jax.random.normal(rng(), (k * k, cin, cout), jnp.float32) * np.sqrt(2.0 / fan_in)
    b = (jax.random.uniform(rng(), (cout,), jnp.float32, -1.0, 1.0) / np.sqrt(fan_in)
         if conv_bias else jnp.zeros((cout,), jnp.float32))
    if has_bn:
        # eval-mode BN fold: gamma=1, beta=0, running_mean=0, running_var=1
        eps = 1e-5
        scale = jnp.ones((cout,), jnp.float32) / jnp.sqrt(1.0 + eps)
        bias = b * scale
    else:
        scale = jnp.ones((cout,), jnp.float32)
        bias = b
    w = w * scale[None, None, :]            # fold BN scale into the weights
    if fold_taps:
        # im2col weight: (1, k*k*cin padded to lanes, cout_p)
        K = k * k * cin
        Kp = _rup(K, LANE)
        wp = w.reshape(1, K, cout)
        wp = jnp.pad(wp, ((0, 0), (0, Kp - K), (0, cout_p - cout)))
    else:
        if cin_segments is None:
            cin_segments = ((cin, _rup(cin, LANE)),)
        wp = _pad_weight(w, cin_segments, cout_p)
    bias_p = jnp.pad(bias, (0, cout_p - cout)).reshape(1, cout_p)
    return dict(w=wp.astype(jnp.bfloat16), bias=bias_p,
                k=k, stride=stride, pad=pad, dil=dil, act=act,
                cout=cout, cout_p=cout_p, fold_taps=fold_taps)


def bottleneck_params(rng, cin, cmid, cout, stride, dil):
    p = dict(
        conv1=conv_params(rng, cin, cmid, 1, 1, 0, 1, act=True),
        conv2=conv_params(rng, cmid, cmid, 3, stride, dil, dil, act=True),
        conv3=conv_params(rng, cmid, cout, 1, 1, 0, 1, act=False),
        short=None,
    )
    if cin != cout or stride > 1:
        p["short"] = conv_params(rng, cin, cout, 1, stride, 0, 1, act=False)
    return p


def resblock_params(rng, n_layers, cin, cmid, cout, stride, dil):
    blocks = []
    for i in range(n_layers):
        layer_in = cin if i == 0 else cout
        layer_stride = 1 if i < n_layers - 1 else stride
        blocks.append(bottleneck_params(rng, layer_in, cmid, cout, layer_stride, dil))
    return blocks


def resbody_params(rng, stem_channels, n_layers=(3, 4, 23, 3)):
    last = stem_channels * 4
    blocks = [resblock_params(rng, n_layers[0], stem_channels, stem_channels,
                              last, 2, 1)]
    for n in range(1, len(n_layers)):
        block_dil = 1 if n < len(n_layers) - 1 else 2
        block_stride = 2 if n < len(n_layers) - 2 else 1
        blocks.append(resblock_params(rng, n_layers[n], last, last // 2,
                                      last * 2, block_stride, block_dil))
        last *= 2
    return blocks


def aspp_params(rng, cin, cout):
    mid = cin // 8
    branches = [
        conv_params(rng, cin, mid, 1, 1, 0, 1, act=True),
        conv_params(rng, cin, mid, 3, 1, 6, 6, act=True),
        conv_params(rng, cin, mid, 3, 1, 12, 12, act=True),
        conv_params(rng, cin, mid, 3, 1, 18, 18, act=True),
    ]
    pool_conv = conv_params(rng, cin, mid, 1, act=False, conv_bias=True, has_bn=False)
    mid_p = _rup(mid, LANE)
    final = conv_params(rng, mid * 5, cout, 1, act=True,
                        cin_segments=tuple((mid, mid_p) for _ in range(5)))
    return dict(branches=branches, pool_conv=pool_conv, final=final)


def build_deeplab_params(rng, in_channels, stem_channels, is_res=True):
    assert is_res, "only the ResBody path is implemented"
    last_out = stem_channels * 32
    return dict(
        in_channels=in_channels,
        # stem uses the strided im2col path (fold_taps): K = 49*cin, no lane-pad
        # waste on cin=3, and no stride-2 recompute on the largest spatial map.
        stem=conv_params(rng, in_channels, stem_channels, 7, stride=2, pad=3,
                         dil=1, act=True, conv_bias=False, has_bn=True,
                         fold_taps=True),
        body=resbody_params(rng, stem_channels),
        aspp=aspp_params(rng, last_out, last_out // 8),
    )


# ---------------------------------------------------------------------------
# Forward passes
# ---------------------------------------------------------------------------
def bottleneck_forward(x, p):
    out = run_conv(x, p["conv1"])
    out = run_conv(out, p["conv2"])
    sc = run_conv(x, p["short"]) if p["short"] is not None else x
    # residual add + ReLU fused into conv3's matmul epilogue
    return run_conv(out, p["conv3"], residual=sc)


def image_pool_forward(x, p):
    B, H, W, _ = x.shape
    pooled = global_avg_pool(x)                    # AdaptiveAvgPool2d(1)
    y = run_conv(pooled, p)                        # 1x1 conv (bias, no BN)
    # bilinear upsample (align_corners=True) of a 1x1 map == broadcast
    return jnp.broadcast_to(y, (B, H, W, y.shape[-1]))


def aspp_forward(x, p):
    feats = [run_conv(x, bp) for bp in p["branches"]]
    feats.append(image_pool_forward(x, p["pool_conv"]))
    cat = jnp.concatenate(feats, axis=-1)
    return run_conv(cat, p["final"])


def deeplab_forward(x_nchw, params):
    x = jnp.transpose(x_nchw, (0, 2, 3, 1)).astype(jnp.bfloat16)   # NCHW -> NHWC
    h = run_conv(x, params["stem"])          # 7x7 s2 conv + BN + ReLU (im2col)
    stem_out = maxpool_3x3_s2_p1(h)          # MaxPool2d(3, 2, padding=1)
    h = stem_out
    for resblock in params["body"]:
        for bneck in resblock:
            h = bottleneck_forward(h, bneck)
    h = aspp_forward(h, params["aspp"])
    out = h[..., :params["aspp"]["final"]["cout"]]       # drop lane padding once
    stem_real = stem_out[..., :params["stem"]["cout"]]
    return (jnp.transpose(out, (0, 3, 1, 2)).astype(jnp.float32),
            jnp.transpose(stem_real, (0, 3, 1, 2)).astype(jnp.float32))


# ---------------------------------------------------------------------------
if __name__ == "__main__":
    B, IN_CH, H, W = 2, 3, 64, 64
    STEM_CH = 8

    rng = KeyGen(42)
    params = build_deeplab_params(rng, IN_CH, STEM_CH, is_res=True)

    x = jax.random.normal(jax.random.PRNGKey(0), (B, IN_CH, H, W), jnp.float32)

    out, stem_out = deeplab_forward(x, params)
    out, stem_out = jax.block_until_ready((out, stem_out))

    assert out.shape == (B, STEM_CH * 4, H // 16, W // 16), out.shape
    assert stem_out.shape == (B, STEM_CH, H // 4, W // 4), stem_out.shape
    assert np.isfinite(np.asarray(out, dtype=np.float32)).all()
    print("KERNEL_OK")
</pallas_src>

<mosaic_0001>
module attributes {stable_mosaic.version = 11 : i64} {
  func.func @_conv_mm_kernel(%arg0: i32, %arg1: i32, %arg2: memref<2048x256xbf16, #tpu.memory_space<vmem>>, %arg3: memref<1x256x128xbf16, #tpu.memory_space<vmem>>, %arg4: memref<1x128xf32, #tpu.memory_space<vmem>>, %arg5: memref<256x128xbf16, #tpu.memory_space<vmem>>) attributes {dimension_semantics = [#tpu.dimension_semantics<parallel>, #tpu.dimension_semantics<parallel>], iteration_bounds = array<i64: 1, 8>, scalar_prefetch = 0 : i64, scratch_operands = 0 : i64, tpu.core_type = #tpu.core_type<tc>, window_params = [{pipeline_mode = #tpu.pipeline_mode<synchronous>, transform_indices = @transform_0, window_bounds = array<i64: 2048, 256>}, {transform_indices = @transform_1, window_bounds = array<i64: 1, 256, 128>}, {transform_indices = @transform_2, window_bounds = array<i64: 1, 128>}, {transform_indices = @transform_3, window_bounds = array<i64: 256, 128>}]} {
    %c256_i32 = arith.constant 256 : i32
    %0 = arith.muli %arg1, %c256_i32 : i32
    %c0_i32 = arith.constant 0 : i32
    %1 = arith.addi %0, %c0_i32 : i32
    %2 = arith.index_cast %1 : i32 to index
    %c0 = arith.constant 0 : index
    %3 = vector.load %arg2[%2, %c0] : memref<2048x256xbf16, #tpu.memory_space<vmem>>, vector<256x256xbf16>
    %c0_0 = arith.constant 0 : index
    %c0_1 = arith.constant 0 : index
    %c0_2 = arith.constant 0 : index
    %4 = vector.load %arg3[%c0_0, %c0_1, %c0_2] : memref<1x256x128xbf16, #tpu.memory_space<vmem>>, vector<1x256x128xbf16>
    %5 = vector.shape_cast %4 : vector<1x256x128xbf16> to vector<256x128xbf16>
    %cst = arith.constant dense<0.000000e+00> : vector<256x128xf32>
    %6 = tpu.matmul %3, %5, %cst {dimension_numbers = #tpu.dot_dimension_numbers<[1], [0], [0], [1], [0, 0, 1, 1], [], []>} : vector<256x256xbf16>, vector<256x128xbf16>, vector<256x128xf32> -> vector<256x128xf32>
    %c0_3 = arith.constant 0 : index
    %c0_4 = arith.constant 0 : index
    %7 = vector.load %arg4[%c0_3, %c0_4] : memref<1x128xf32, #tpu.memory_space<vmem>>, vector<1x128xf32>
    %8 = vector.broadcast %7 : vector<1x128xf32> to vector<256x128xf32>
    %9 = arith.addf %6, %8 : vector<256x128xf32>
    %cst_5 = arith.constant 0.000000e+00 : f32
    %10 = vector.broadcast %cst_5 : f32 to vector<256x128xf32>
    %11 = arith.maximumf %9, %10 : vector<256x128xf32>
    %12 = arith.truncf %11 : vector<256x128xf32> to vector<256x128xbf16>
    %c0_6 = arith.constant 0 : index
    %c0_7 = arith.constant 0 : index
    %13 = vector.load %arg5[%c0_6, %c0_7] : memref<256x128xbf16, #tpu.memory_space<vmem>>, vector<256x128xbf16>
    tpu.vector_store %arg5[%c0_6, %c0_7], %12 {strides = array<i32>} : memref<256x128xbf16, #tpu.memory_space<vmem>>, vector<256x128xbf16>,
    return
  }
  func.func @transform_0(%arg0: i32, %arg1: i32) -> (i32, i32) {
    %c0_i32 = arith.constant 0 : i32
    %c0_i32_0 = arith.constant 0 : i32
    %c0_i32_1 = arith.constant 0 : i32
    return %c0_i32, %c0_i32_0 : i32, i32
  }
  func.func @transform_1(%arg0: i32, %arg1: i32) -> (i32, i32, i32) {
    %c0_i32 = arith.constant 0 : i32
    %c0_i32_0 = arith.constant 0 : i32
    %c0_i32_1 = arith.constant 0 : i32
    return %c0_i32, %c0_i32_0, %arg0 : i32, i32, i32
  }
  func.func @transform_2(%arg0: i32, %arg1: i32) -> (i32, i32) {
    %c0_i32 = arith.constant 0 : i32
    %c0_i32_0 = arith.constant 0 : i32
    return %c0_i32, %arg0 : i32, i32
  }
  func.func @transform_3(%arg0: i32, %arg1: i32) -> (i32, i32) {
    %c0_i32 = arith.constant 0 : i32
    return %arg1, %arg0 : i32, i32
  }
}

</mosaic_0001>

<bundles_post_ra>
// kernel: _conv_matmul.1
= control target key start
LH: loop header
LB: loop body
LE: loop exit
PB: predicated region body
PF: predicated region fallthrough
CT: control target
= control target key end

     0   :  { %8 = vsyncpa [#allocation3], 0  ;;  %s1970_s0 = inlined_call_operand.hbm [shape: bf16[2048,256], index: 0, kind: input, shape index: {}]   ;;  %s1971_s1 = inlined_call_operand.hbm [shape: bf16[1,256,128], index: 1, kind: input, shape index: {}]   ;;  %s1972_s2 = inlined_call_operand.vmem [shape: f32[1,128], index: 2, kind: input, shape index: {}]   ;;  %s1973_s3 = inlined_call_operand.hbm [shape: bf16[2048,128], index: 3, kind: output, shape index: {}]  }
   0x1   :  { %9 = vsyncpa [#allocation6], 0 }
   0x2   :  { %10 = vsyncpa [#allocation4], 0 }
   0x3   :  { %12 = vsyncpa [#allocation4 + $0x1], 0  ;;  %s1690_s12 = smov 0   ;;  %s1692_s13 = smov 0  }
   0x4   :  { %s1694_s14 = smov 0   ;;  %s1696_s15 = smov 0  }
   0x5   :  { %s1698_s16 = smov 0   ;;  %s1700_s17 = smov 0  }
   0x6 LB: > { %s1015_s18 = sadd.s32 4294967295, %s1659_s17   ;;  %s1016_s19 = sadd.s32 4294967294, %s1659_s17   ;;  %s1659_s17 = sphi %s1700_s17, %s18_s17   ;;  %s1655_s16 = sphi %s1698_s16, %s1991_s16   ;;  %s1651_s15 = sphi %s1696_s15, %s1990_s15   ;;  %s1647_s14 = sphi %s1694_s14, %s1989_s14   ;;  %s1643_s13 = sphi %s1692_s13, %s1988_s13   ;;  %s1639_s12 = sphi %s1690_s12, %s1987_s12  }
   0x7   : > { %s27_s20 = sadd.s32 1, %s1655_s16  ;;  %s112_s21 = sadd.s32 1, %s1647_s14 }
   0x8   : > { %p28_p0 = scmp.ge.s32.totalorder %s27_s20, 8  ;;  %p122_p1 = scmp.ne.s32.totalorder %s1647_s14, %s1643_s13 }
   0x9   : > { %p123_p2 = scmp.eq.s32.totalorder %s1015_s18, 7  ;;  %p128_p3 = scmp.ne.s32.totalorder %s1643_s13, %s1639_s12 }
   0xa   : > { %s1993_s20 = smov (%p28_p0, %s27_s20), 0  ;;  %p129_p5 = scmp.eq.s32.totalorder %s1016_s19, 7 }
   0xb   : > { %p1730_p4 = por %p123_p2, %p122_p1  ;;  %s107_s23 = ssub.s32 %s1655_s16, %s1993_s20 }
   0xc   : > { %p1017_p6 = scmp.ge.s32.totalorder %s1659_s17, 1  ;;  %p110_p7 = scmp.eq.s32.totalorder %s107_s23, 0 }
   0xd   : > { %s1978_s22 = scalar_select %p1730_p4, 1, 0 }
   0xe   : > { %p1737_p8 = por %p129_p5, %p128_p3  ;;  %p136_p9 = scmp.lt.s32.totalorder %s1659_s17, 9 }
   0xf   : > { %s1743_s25 = scalar_select %p110_p7, %s1647_s14, %s112_s21  }
  0x10   : > { %s1979_s24 = scalar_select %p1737_p8, 1, 0 }
  0x11   : > { %p1745_p10 = pnand %p1017_p6, %p136_p9  ;;  %p1749_p11 = scmp.eq.s32.totalorder %s1015_s18, 0 }
  0x12   : > { %s1661_s28 = smov [#allocation2]   ;;  %s1662_s4 = smov [#allocation5]  }
  0x13   : > { %s1980_s26 = scalar_select %p1745_p10, 1, 0 }
  0x14   : > { %s1981_s27 = scalar_select %p1749_p11, 1, 0 }
  0x15   : > { %p1381_p12 = pneg %p1745_p10  ;;  %s148_s29 = sshll.u32 %s1661_s28, 4  ;;  %s149_s29 = int_to_ptr.vmem [resolvable:$true] %s148_s29 }
  0x16   : > { %s163_s5 = sshll.u32 %s1662_s4, 4  ;;  %s1517_s8 = scalar_lea.hbm %s1970_s0, 32768  ;;  %s1761_s5 = int_to_ptr.vmem [resolvable:$true] %s163_s5 }
  0x17   : > { %p1757_p13 = pnand %p1749_p11, %p1381_p12  ;;  %p1518_p0 = scmp.ne.s32.totalorder %s1970_s0, %s1517_s8 }
  0x18   : > { %p1524_p5 = scmp.lt.u32.totalorder %s1517_s8, %s1970_s0 }
  0x19   : > { %p1519_p1 = pneg %p1757_p13 }
  0x1b   : > { %p1520_p2 = pnand %p1519_p1, %p1518_p0 }
  0x1d   : > { %p1521_p3 = pneg %p1520_p2 }
  0x1f   : > { %p1526_p6 = pnand %p1524_p5, %p1521_p3 }
  0x21   : > { %1529 = shalt.err (!%p1526_p6)
}
  0x22   : > { %s1530_s19 = scalar_lea.vmem %s149_s29, 32768  ;;  %p1538_p8 = scmp.lt.s32.totalorder %s149_s29, %s149_s29 }
  0x23   : > { %p1531_p7 = scmp.ne.s32.totalorder %s149_s29, %s1530_s19  ;;  %p1539_p4 = scmp.lt.s32.totalorder %s1530_s19, %s1530_s19 }
  0x25   : > { %p1533_p9 = pnand %p1531_p7, %p1519_p1  ;;  %p1540_p11 = por %p1539_p4, %p1538_p8 }
  0x27   : > { %p1534_p12 = pneg %p1533_p9 }
  0x29   : > { %p1541_p10 = pnand %p1540_p11, %p1534_p12 }
  0x2b   : > { %1544 = shalt.err (!%p1541_p10)
}
  0x2c   : > { %s1663_s21 = smov 128   ;;  %s1664_s23 = smov 8  }
  0x2d   : > { %1384 = dma.hbm_to_vmem [thread:$0]  (!%p1757_p13), %s1970_s0, 32768, %s149_s29, [#allocation3], %s1663_s21, %s1663_s21, %s1664_s23  }
  0x2e   : > { %s1545_s8 = scalar_lea.hbm %s1971_s1, 2048 }
  0x2f   : > { %p1546_p0 = scmp.ne.s32.totalorder %s1971_s1, %s1545_s8  ;;  %p1552_p10 = scmp.lt.u32.totalorder %s1545_s8, %s1971_s1 }
  0x31   : > { %p1548_p4 = pnand %p1546_p0, %p1519_p1 }
  0x33   : > { %p1549_p8 = pneg %p1548_p4 }
  0x35   : > { %p1554_p11 = pnand %p1552_p10, %p1549_p8 }
  0x37   : > { %1557 = shalt.err (!%p1554_p11)
}
  0x38   : > { %s1558_s29 = scalar_lea.vmem %s1761_s5, 2048  ;;  %p1566_p6 = scmp.lt.s32.totalorder %s1761_s5, %s1761_s5 }
  0x39   : > { %p1559_p2 = scmp.ne.s32.totalorder %s1761_s5, %s1558_s29  ;;  %p1567_p7 = scmp.lt.s32.totalorder %s1558_s29, %s1558_s29 }
  0x3b   : > { %p1561_p3 = pnand %p1559_p2, %p1519_p1  ;;  %p1568_p9 = por %p1567_p7, %p1566_p6 }
  0x3d   : > { %p1562_p5 = pneg %p1561_p3 }
  0x3f   : > { %p1569_p12 = pnand %p1568_p9, %p1562_p5 }
  0x41   : > { %1572 = shalt.err (!%p1569_p12)
}
  0x42   : > { %s1665_s19 = smov 64   ;;  %s1666_s21 = smov 4  }
  0x43   : > { %1387 = dma.hbm_to_vmem [thread:$0]  (!%p1757_p13), %s1971_s1, 2048, %s1761_s5, [#allocation6], %s1665_s19, %s1665_s19, %s1666_s21  }
  0x44   : > { %p1983_p0 = scmp.ne.s32.totalorder %s1980_s26, 0 }
  0x45   : > { %p1984_p1 = scmp.ne.s32.totalorder (!%p1983_p0), %s1981_s27, 0 }
  0x46   : > { %185 = sbr.rel (%p1983_p0) target bundleno = 408 (0x198), region = 32 }
  0x4d   : > { %1626 = dma.done.wait (%p1984_p1), [#allocation3], 32768  }
  0x4e   : > { %1628 = vsyncadd (%p1984_p1), [#allocation3], 4294934528 }
  0x4f   : > { %1630 = dma.done.wait (%p1984_p1), [#allocation6], 2048  }
  0x50   : > { %1632 = vsyncadd (%p1984_p1), [#allocation6], 4294965248  ;;  %v1453_v0 = vld [vmem:[#allocation5 + $0x40] sm:$0xff]   ;;  %v1455_v2 = vld [vmem:[#allocation5 + $0x48] sm:$0xff]   ;;  %s1025_s26 = sshll.u32 %s1651_s15, 8  ;;  %s208_s4 = sand.u32 1, %s1643_s13  }
  0x51   : > { %v1454_v1 = vld [vmem:[#allocation5] sm:$0xff]   ;;  %1243 = vmatprep.subr.bf16.mxu0 %v1453_v0  ;;  %1355 = vmatprep.subr.bf16.mxu1 %v1453_v0  ;;  %v1456_v3 = vld [vmem:[#allocation5 + $0x8] sm:$0xff]   ;;  %v1457_v4 = vld [vmem:[#allocation5 + $0x50] sm:$0xff]   ;;  %s1821_s27 = scalar_lea.vmem [#allocation2], %s1025_s26  ;;  %s1024_s6 = sshll.u32 %s208_s4, 7 }
  0x52   : > { %1244 = vmatpush3.bf16.msra.mxu0 %v1454_v1  ;;  %1363 = vmatpush3.bf16.msra.mxu1 %v1454_v1  ;;  %v1458_v5 = vld [vmem:[#allocation5 + $0x10] sm:$0xff]   ;;  %v1459_v6 = vld [vmem:[#allocation5 + $0x58] sm:$0xff]   ;;  %v1461_v8 = vld [vmem:[#allocation5 + $0x60] sm:$0xff]   ;;  %s1867_s7 = scalar_lea.vmem [#allocation7], %s1024_s6  ;;  %s1147_s8 = sshll.u32 %s1651_s15, 11 }
  0x53   : > { %1245 = vmatprep.subr.bf16.mxu0 %v1455_v2  ;;  %1356 = vmatprep.subr.bf16.mxu1 %v1455_v2  ;;  %v1460_v7 = vld [vmem:[#allocation5 + $0x18] sm:$0xff]   ;;  %v1462_v9 = vld [vmem:[#allocation5 + $0x20] sm:$0xff]   ;;  %v1463_v10 = vld [vmem:[#allocation5 + $0x68] sm:$0xff]   ;;  %s917_s9 = sshll.u32 %s1867_s7, 4  ;;  %s1916_s18 = scalar_lea.hbm %s1973_s3, %s1147_s8  ;;  %s1918_s9 = int_to_ptr.vmem [resolvable:$true] %s917_s9 }
  0x54   : > { %v1471_v11 = vld [vmem:[%s1821_s27 + $0x4] ss:$8 sps:$4 sm:$0xff]   ;;  %v1465_v14 = vld [vmem:[#allocation5 + $0x70] sm:$0xff]   ;;  %v1467_v16 = vld [vmem:[#allocation5 + $0x78] sm:$0xff]   ;;  %s1924_s15 = scalar_lea.sflag [#allocation4], %s208_s4  ;;  %s1573_s29 = scalar_lea.vmem %s1918_s9, 2048 }
  0x55   : > { %v1474_v12 = vld [vmem:[%s1821_s27 + $0x84] ss:$8 sps:$4 sm:$0xff]   ;;  %581 = vmatprep.mubr.bf16.mxu0 %v1471_v11  ;;  %v1466_v15 = vld [vmem:[#allocation5 + $0x30] sm:$0xff]   ;;  %v1468_v17 = vld [vmem:[#allocation5 + $0x38] sm:$0xff]   ;;  %p1574_p13 = scmp.ne.s32.totalorder %s1918_s9, %s1573_s29  ;;  %p1985_p4 = scmp.ne.s32.totalorder %s1978_s22, 0 }
  0x56   : > { %1246 = vmatpush3.bf16.msra.mxu0 %v1456_v3  ;;  %1364 = vmatpush3.bf16.msra.mxu1 %v1456_v3  ;;  %v1464_v13 = vld [vmem:[#allocation5 + $0x28] sm:$0xff]   ;;  %v1475_v20 = vld [vmem:[%s1821_s27 + $0x14] ss:$8 sps:$4 sm:$0xff]   ;;  %v1479_v22 = vld [vmem:[%s1821_s27 + $0x10] ss:$8 sps:$4 sm:$0xff]   ;;  %s1667_s19 = smov [#allocation7]  }
  0x57   : > { %1247 = vmatprep.subr.bf16.mxu0 %v1457_v4  ;;  %1357 = vmatprep.subr.bf16.mxu1 %v1457_v4  ;;  %v1469_v18 = vld [vmem:[%s1821_s27] ss:$8 sps:$4 sm:$0xff]   ;;  %v1477_v21 = vld [vmem:[%s1821_s27 + $0x94] ss:$8 sps:$4 sm:$0xff]   ;;  %v1480_v23 = vld [vmem:[%s1821_s27 + $0x90] ss:$8 sps:$4 sm:$0xff]   ;;  %p1575_p8 = pnand %p1574_p13, %p1985_p4 }
  0x58   : > { %645 = vmatprep.mubr.bf16.mxu1 %v1474_v12  ;;  %v1472_v19 = vld [vmem:[%s1821_s27 + $0x80] ss:$8 sps:$4 sm:$0xff]   ;;  %v1481_v24 = vld [vmem:[%s1821_s27 + $0x24] ss:$8 sps:$4 sm:$0xff]   ;;  %v1487_v28 = vld [vmem:[%s1821_s27 + $0x34] ss:$8 sps:$4 sm:$0xff]  }
  0x59   : > { %v1483_v25 = vld [vmem:[%s1821_s27 + $0xa4] ss:$8 sps:$4 sm:$0xff]   ;;  %v1485_v26 = vld [vmem:[%s1821_s27 + $0x20] ss:$8 sps:$4 sm:$0xff]   ;;  %v1489_v29 = vld [vmem:[%s1821_s27 + $0xb4] ss:$8 sps:$4 sm:$0xff]   ;;  %p1576_p10 = pneg %p1575_p8 }
  0x5a   : > { %1248 = vmatpush3.bf16.msra.mxu0 %v1458_v5  ;;  %1365 = vmatpush3.bf16.msra.mxu1 %v1458_v5  ;;  %v1486_v27 = vld [vmem:[%s1821_s27 + $0xa0] ss:$8 sps:$4 sm:$0xff]   ;;  %v1491_v30 = vld [vmem:[%s1821_s27 + $0x30] ss:$8 sps:$4 sm:$0xff]   ;;  %v1493_v32 = vld [vmem:[%s1821_s27 + $0x44] ss:$8 sps:$4 sm:$0xff]  }
  0x5b   : > { %1249 = vmatprep.subr.bf16.mxu0 %v1459_v6  ;;  %1358 = vmatprep.subr.bf16.mxu1 %v1459_v6  ;;  %v1492_v31 = vld [vmem:[%s1821_s27 + $0xb0] ss:$8 sps:$4 sm:$0xff]   ;;  %v1495_v33 = vld [vmem:[%s1821_s27 + $0xc4] ss:$8 sps:$4 sm:$0xff]   ;;  %v1497_v34 = vld [vmem:[%s1821_s27 + $0x40] ss:$8 sps:$4 sm:$0xff]  }
  0x5c   : > { %v1498_v35 = vld [vmem:[%s1821_s27 + $0xc0] ss:$8 sps:$4 sm:$0xff]   ;;  %v1499_v36 = vld [vmem:[%s1821_s27 + $0x54] ss:$8 sps:$4 sm:$0xff]   ;;  %v1503_v38 = vld [vmem:[%s1821_s27 + $0x50] ss:$8 sps:$4 sm:$0xff]  }
  0x5d   : > { %v1501_v37 = vld [vmem:[%s1821_s27 + $0xd4] ss:$8 sps:$4 sm:$0xff]   ;;  %v1504_v39 = vld [vmem:[%s1821_s27 + $0xd0] ss:$8 sps:$4 sm:$0xff]   ;;  %v1505_v40 = vld [vmem:[%s1821_s27 + $0x64] ss:$8 sps:$4 sm:$0xff]  }
  0x5e   : > { %1250 = vmatpush3.bf16.msra.mxu0 %v1460_v7  ;;  %1366 = vmatpush3.bf16.msra.mxu1 %v1460_v7  ;;  %v1507_v41 = vld [vmem:[%s1821_s27 + $0xe4] ss:$8 sps:$4 sm:$0xff]   ;;  %v1509_v42 = vld [vmem:[%s1821_s27 + $0x60] ss:$8 sps:$4 sm:$0xff]   ;;  %v1511_v44 = vld [vmem:[%s1821_s27 + $0x74] ss:$8 sps:$4 sm:$0xff]  }
  0x5f   : > { %1251 = vmatprep.subr.bf16.mxu0 %v1461_v8  ;;  %1359 = vmatprep.subr.bf16.mxu1 %v1461_v8  ;;  %v1510_v43 = vld [vmem:[%s1821_s27 + $0xe0] ss:$8 sps:$4 sm:$0xff]   ;;  %v1513_v45 = vld [vmem:[%s1821_s27 + $0xf4] ss:$8 sps:$4 sm:$0xff]   ;;  %v1515_v46 = vld [vmem:[%s1821_s27 + $0x70] ss:$8 sps:$4 sm:$0xff]  }
  0x60   : > { %v1516_v47 = vld [vmem:[%s1821_s27 + $0xf0] ss:$8 sps:$4 sm:$0xff]   ;;  %v1858_v50 = vld [vmem:[%s1972_s2] ss:$0 sm:$0xff]  ;;  %s1577_s21 = sshll.u32 %s1667_s19, 4  ;;  %s1578_s21 = int_to_ptr.vmem [resolvable:$false] %s1577_s21 }
  0x61   : > { %s1579_s23 = scalar_lea.vmem %s1578_s21, 4096  ;;  %p1580_p11 = scmp.lt.s32.totalorder %s1918_s9, %s1578_s21 }
  0x62   : > { %1252 = vmatpush3.bf16.msra.mxu0 %v1462_v9  ;;  %1367 = vmatpush3.bf16.msra.mxu1 %v1462_v9  ;;  %p1581_p2 = scmp.lt.s32.totalorder %s1579_s23, %s1573_s29 }
  0x63   : > { %1253 = vmatprep.subr.bf16.mxu0 %v1463_v10  ;;  %1360 = vmatprep.subr.bf16.mxu1 %v1463_v10 }
  0x64   : > { %p1582_p3 = por %p1581_p2, %p1580_p11 }
  0x66   : > { %1254 = vmatpush3.bf16.msra.mxu0 %v1464_v13  ;;  %1368 = vmatpush3.bf16.msra.mxu1 %v1464_v13  ;;  %p1583_p5 = pnand %p1582_p3, %p1576_p10 }
  0x67   : > { %1255 = vmatprep.subr.bf16.mxu0 %v1465_v14  ;;  %1361 = vmatprep.subr.bf16.mxu1 %v1465_v14 }
  0x6a   : > { %1256 = vmatpush3.bf16.msra.mxu0 %v1466_v15  ;;  %1369 = vmatpush3.bf16.msra.mxu1 %v1466_v15 }
  0x6b   : > { %1257 = vmatprep.subr.bf16.mxu0 %v1467_v16  ;;  %1362 = vmatprep.subr.bf16.mxu1 %v1467_v16 }
  0x6e   : > { %1258 = vmatpush3.bf16.msra.mxu0 %v1468_v17  ;;  %1370 = vmatpush3.bf16.msra.mxu1 %v1468_v17 }
  0x71   : > { %582 = vmatmul.mubr.bf16.vlgmr.msra.gmra.mrb[0].mxu0 %v1469_v18  ;;  %646 = vmatmul.mubr.bf16.vlgmr.msra.gmra.mrb[0].mxu1 %v1472_v19 }
  0x72   : > { %589 = vmatprep.mubr.bf16.mxu0 %v1475_v20  ;;  %653 = vmatprep.mubr.bf16.mxu1 %v1477_v21 }
  0x79   : > { %590 = vmatmul.mubr.bf16.gmra.mrb[4].mxu0 %v1479_v22  ;;  %654 = vmatmul.mubr.bf16.gmra.mrb[4].mxu1 %v1480_v23 }
  0x7a   : > { %597 = vmatprep.mubr.bf16.mxu0 %v1481_v24  ;;  %661 = vmatprep.mubr.bf16.mxu1 %v1483_v25 }
  0x81   : > { %598 = vmatmul.mubr.bf16.gmra.mrb[8].mxu0 %v1485_v26  ;;  %662 = vmatmul.mubr.bf16.gmra.mrb[8].mxu1 %v1486_v27 }
  0x82   : > { %605 = vmatprep.mubr.bf16.mxu0 %v1487_v28  ;;  %669 = vmatprep.mubr.bf16.mxu1 %v1489_v29 }
  0x89   : > { %606 = vmatmul.mubr.bf16.gmra.mrb[12].mxu0 %v1491_v30  ;;  %670 = vmatmul.mubr.bf16.gmra.mrb[12].mxu1 %v1492_v31 }
  0x8a   : > { %613 = vmatprep.mubr.bf16.mxu0 %v1493_v32  ;;  %677 = vmatprep.mubr.bf16.mxu1 %v1495_v33 }
  0x91   : > { %614 = vmatmul.mubr.bf16.gmra.mrb[16].mxu0 %v1497_v34  ;;  %678 = vmatmul.mubr.bf16.gmra.mrb[16].mxu1 %v1498_v35 }
  0x92   : > { %621 = vmatprep.mubr.bf16.mxu0 %v1499_v36  ;;  %685 = vmatprep.mubr.bf16.mxu1 %v1501_v37 }
  0x99   : > { %622 = vmatmul.mubr.bf16.gmra.mrb[20].mxu0 %v1503_v38  ;;  %686 = vmatmul.mubr.bf16.gmra.mrb[20].mxu1 %v1504_v39 }
  0x9a   : > { %629 = vmatprep.mubr.bf16.mxu0 %v1505_v40  ;;  %693 = vmatprep.mubr.bf16.mxu1 %v1507_v41 }
  0xa1   : > { %630 = vmatmul.mubr.bf16.gmra.mrb[24].mxu0 %v1509_v42  ;;  %694 = vmatmul.mubr.bf16.gmra.mrb[24].mxu1 %v1510_v43 }
  0xa2   : > { %637 = vmatprep.mubr.bf16.mxu0 %v1511_v44  ;;  %701 = vmatprep.mubr.bf16.mxu1 %v1513_v45 }
  0xa9   : > { %638 = vmatmul.mubr.bf16.gmra.mrb[28].mxu0 %v1515_v46  ;;  %702 = vmatmul.mubr.bf16.gmra.mrb[28].mxu1 %v1516_v47 }
 0x144   : > { %v1259_v48 = vpop.f32.mrb[0].mxu0  ;;  %v1307_v49 = vpop.f32.mrb[0].mxu1 }
 0x145   : > { %v1260_v51 = vpop.f32.mrb[1].mxu0  ;;  %v1308_v52 = vpop.f32.mrb[1].mxu1 }
 0x146   : > { %v1261_v53 = vadd.f32 %v1260_v51, %v1259_v48  ;;  %v1309_v54 = vadd.f32 %v1308_v52, %v1307_v49  ;;  %v1262_v55 = vpop.f32.mrb[2].mxu0  ;;  %v1310_v56 = vpop.f32.mrb[2].mxu1 }
 0x147   : > { %v1263_v57 = vpop.f32.mrb[3].mxu0  ;;  %v1311_v58 = vpop.f32.mrb[3].mxu1 }
 0x148   : > { %v584_v59 = vadd.f32 %v1261_v53, %v1858_v50  ;;  %v648_v60 = vadd.f32 %v1309_v54, %v1858_v50  ;;  %v1264_v61 = vadd.f32 %v1263_v57, %v1262_v55  ;;  %v1312_v62 = vadd.f32 %v1311_v58, %v1310_v56 }
 0x14a   : > { %v587_v63 = vadd.f32 %v1264_v61, %v1858_v50  ;;  %v651_v0 = vadd.f32 %v1312_v62, %v1858_v50  ;;  %v710_v1 = vmax.f32 %v584_v59, 0.0  ;;  %v726_v2 = vmax.f32 %v648_v60, 0.0 }
 0x14c   : > { %v711_v3 = vmax.f32 %v587_v63, 0.0  ;;  %v727_v4 = vmax.f32 %v651_v0, 0.0  ;;  %v1265_v5 = vpop.f32.mrb[4].mxu0  ;;  %v1313_v6 = vpop.f32.mrb[4].mxu1 }
 0x14d   : > { %v1266_v7 = vpop.f32.mrb[5].mxu0  ;;  %v1314_v8 = vpop.f32.mrb[5].mxu1 }
 0x14e   : > { %v1151_v9 = vpack.c.bf16 %v711_v3, %v710_v1  ;;  %v1191_v10 = vpack.c.bf16 %v727_v4, %v726_v2  ;;  %v1267_v11 = vadd.f32 %v1266_v7, %v1265_v5  ;;  %v1315_v12 = vadd.f32 %v1314_v8, %v1313_v6  ;;  %v1268_v13 = vpop.f32.mrb[6].mxu0  ;;  %v1316_v14 = vpop.f32.mrb[6].mxu1 }
 0x14f   : > { %v1269_v15 = vpop.f32.mrb[7].mxu0  ;;  %v1317_v16 = vpop.f32.mrb[7].mxu1 }
 0x150   : > { %1152 = vst [vmem:[%s1867_s7] sm:$0xff] %v1151_v9   ;;  %1235 = vst [vmem:[%s1867_s7 + $0x40] sm:$0xff] %v1191_v10   ;;  %v592_v17 = vadd.f32 %v1267_v11, %v1858_v50  ;;  %v656_v18 = vadd.f32 %v1315_v12, %v1858_v50  ;;  %v1270_v19 = vadd.f32 %v1269_v15, %v1268_v13 }
 0x151   : > { %v1318_v20 = vadd.f32 %v1317_v16, %v1316_v14 }
 0x152   : > { %v595_v21 = vadd.f32 %v1270_v19, %v1858_v50  ;;  %v712_v23 = vmax.f32 %v592_v17, 0.0  ;;  %v728_v24 = vmax.f32 %v656_v18, 0.0 }
 0x153   : > { %v659_v22 = vadd.f32 %v1318_v20, %v1858_v50 }
 0x154   : > { %v713_v25 = vmax.f32 %v595_v21, 0.0  ;;  %v1271_v27 = vpop.f32.mrb[8].mxu0  ;;  %v1319_v28 = vpop.f32.mrb[8].mxu1 }
 0x155   : > { %v729_v26 = vmax.f32 %v659_v22, 0.0  ;;  %v1272_v29 = vpop.f32.mrb[9].mxu0  ;;  %v1320_v30 = vpop.f32.mrb[9].mxu1 }
 0x156   : > { %v1156_v31 = vpack.c.bf16 %v713_v25, %v712_v23  ;;  %v1273_v33 = vadd.f32 %v1272_v29, %v1271_v27  ;;  %v1321_v34 = vadd.f32 %v1320_v30, %v1319_v28  ;;  %v1274_v35 = vpop.f32.mrb[10].mxu0  ;;  %v1322_v36 = vpop.f32.mrb[10].mxu1 }
 0x157   : > { %v1196_v32 = vpack.c.bf16 %v729_v26, %v728_v24  ;;  %v1275_v37 = vpop.f32.mrb[11].mxu0  ;;  %v1323_v38 = vpop.f32.mrb[11].mxu1 }
 0x158   : > { %1228 = vst [vmem:[%s1867_s7 + $0x8] sm:$0xff] %v1156_v31   ;;  %v600_v39 = vadd.f32 %v1273_v33, %v1858_v50  ;;  %v664_v40 = vadd.f32 %v1321_v34, %v1858_v50  ;;  %v1276_v41 = vadd.f32 %v1275_v37, %v1274_v35  ;;  %v1324_v42 = vadd.f32 %v1323_v38, %v1322_v36 }
 0x159   : > { %1236 = vst [vmem:[%s1867_s7 + $0x48] sm:$0xff] %v1196_v32  }
 0x15a   : > { %v603_v43 = vadd.f32 %v1276_v41, %v1858_v50  ;;  %v667_v44 = vadd.f32 %v1324_v42, %v1858_v50  ;;  %v714_v45 = vmax.f32 %v600_v39, 0.0  ;;  %v730_v46 = vmax.f32 %v664_v40, 0.0 }
 0x15c   : > { %v715_v47 = vmax.f32 %v603_v43, 0.0  ;;  %v731_v48 = vmax.f32 %v667_v44, 0.0  ;;  %v1277_v49 = vpop.f32.mrb[12].mxu0  ;;  %v1325_v51 = vpop.f32.mrb[12].mxu1 }
 0x15d   : > { %v1278_v52 = vpop.f32.mrb[13].mxu0  ;;  %v1326_v53 = vpop.f32.mrb[13].mxu1 }
 0x15e   : > { %v1161_v54 = vpack.c.bf16 %v715_v47, %v714_v45  ;;  %v1201_v55 = vpack.c.bf16 %v731_v48, %v730_v46  ;;  %v1279_v56 = vadd.f32 %v1278_v52, %v1277_v49  ;;  %v1327_v57 = vadd.f32 %v1326_v53, %v1325_v51  ;;  %v1280_v58 = vpop.f32.mrb[14].mxu0  ;;  %v1328_v59 = vpop.f32.mrb[14].mxu1 }
 0x15f   : > { %v1281_v60 = vpop.f32.mrb[15].mxu0  ;;  %v1329_v61 = vpop.f32.mrb[15].mxu1 }
 0x160   : > { %1229 = vst [vmem:[%s1867_s7 + $0x10] sm:$0xff] %v1161_v54   ;;  %1237 = vst [vmem:[%s1867_s7 + $0x50] sm:$0xff] %v1201_v55   ;;  %v608_v62 = vadd.f32 %v1279_v56, %v1858_v50  ;;  %v672_v63 = vadd.f32 %v1327_v57, %v1858_v50  ;;  %v1282_v0 = vadd.f32 %v1281_v60, %v1280_v58 }
 0x161   : > { %v1330_v1 = vadd.f32 %v1329_v61, %v1328_v59 }
 0x162   : > { %v611_v2 = vadd.f32 %v1282_v0, %v1858_v50  ;;  %v716_v4 = vmax.f32 %v608_v62, 0.0  ;;  %v732_v5 = vmax.f32 %v672_v63, 0.0 }
 0x163   : > { %v675_v3 = vadd.f32 %v1330_v1, %v1858_v50 }
 0x164   : > { %v717_v6 = vmax.f32 %v611_v2, 0.0  ;;  %v1283_v8 = vpop.f32.mrb[16].mxu0  ;;  %v1331_v9 = vpop.f32.mrb[16].mxu1 }
 0x165   : > { %v733_v7 = vmax.f32 %v675_v3, 0.0  ;;  %v1284_v10 = vpop.f32.mrb[17].mxu0  ;;  %v1332_v11 = vpop.f32.mrb[17].mxu1 }
 0x166   : > { %v1166_v12 = vpack.c.bf16 %v717_v6, %v716_v4  ;;  %v1285_v14 = vadd.f32 %v1284_v10, %v1283_v8  ;;  %v1333_v15 = vadd.f32 %v1332_v11, %v1331_v9  ;;  %v1286_v16 = vpop.f32.mrb[18].mxu0  ;;  %v1334_v17 = vpop.f32.mrb[18].mxu1 }
 0x167   : > { %v1206_v13 = vpack.c.bf16 %v733_v7, %v732_v5  ;;  %v1287_v18 = vpop.f32.mrb[19].mxu0  ;;  %v1335_v19 = vpop.f32.mrb[19].mxu1 }
 0x168   : > { %1230 = vst [vmem:[%s1867_s7 + $0x18] sm:$0xff] %v1166_v12   ;;  %v616_v20 = vadd.f32 %v1285_v14, %v1858_v50  ;;  %v680_v21 = vadd.f32 %v1333_v15, %v1858_v50  ;;  %v1288_v22 = vadd.f32 %v1287_v18, %v1286_v16  ;;  %v1336_v23 = vadd.f32 %v1335_v19, %v1334_v17 }
 0x169   : > { %1238 = vst [vmem:[%s1867_s7 + $0x58] sm:$0xff] %v1206_v13  }
 0x16a   : > { %v619_v24 = vadd.f32 %v1288_v22, %v1858_v50  ;;  %v683_v25 = vadd.f32 %v1336_v23, %v1858_v50  ;;  %v718_v26 = vmax.f32 %v616_v20, 0.0  ;;  %v734_v27 = vmax.f32 %v680_v21, 0.0 }
 0x16c   : > { %v719_v28 = vmax.f32 %v619_v24, 0.0  ;;  %v735_v29 = vmax.f32 %v683_v25, 0.0  ;;  %v1289_v30 = vpop.f32.mrb[20].mxu0  ;;  %v1337_v31 = vpop.f32.mrb[20].mxu1 }
 0x16d   : > { %v1290_v32 = vpop.f32.mrb[21].mxu0  ;;  %v1338_v33 = vpop.f32.mrb[21].mxu1 }
 0x16e   : > { %v1171_v34 = vpack.c.bf16 %v719_v28, %v718_v26  ;;  %v1211_v35 = vpack.c.bf16 %v735_v29, %v734_v27  ;;  %v1291_v36 = vadd.f32 %v1290_v32, %v1289_v30  ;;  %v1339_v37 = vadd.f32 %v1338_v33, %v1337_v31  ;;  %v1292_v38 = vpop.f32.mrb[22].mxu0  ;;  %v1340_v39 = vpop.f32.mrb[22].mxu1 }
 0x16f   : > { %v1293_v40 = vpop.f32.mrb[23].mxu0  ;;  %v1341_v41 = vpop.f32.mrb[23].mxu1 }
 0x170   : > { %1231 = vst [vmem:[%s1867_s7 + $0x20] sm:$0xff] %v1171_v34   ;;  %1239 = vst [vmem:[%s1867_s7 + $0x60] sm:$0xff] %v1211_v35   ;;  %v624_v42 = vadd.f32 %v1291_v36, %v1858_v50  ;;  %v688_v43 = vadd.f32 %v1339_v37, %v1858_v50  ;;  %v1294_v44 = vadd.f32 %v1293_v40, %v1292_v38 }
 0x171   : > { %v1342_v45 = vadd.f32 %v1341_v41, %v1340_v39 }
 0x172   : > { %v627_v46 = vadd.f32 %v1294_v44, %v1858_v50  ;;  %v720_v48 = vmax.f32 %v624_v42, 0.0  ;;  %v736_v49 = vmax.f32 %v688_v43, 0.0 }
 0x173   : > { %v691_v47 = vadd.f32 %v1342_v45, %v1858_v50 }
 0x174   : > { %v721_v51 = vmax.f32 %v627_v46, 0.0  ;;  %v1295_v53 = vpop.f32.mrb[24].mxu0  ;;  %v1343_v54 = vpop.f32.mrb[24].mxu1 }
 0x175   : > { %v737_v52 = vmax.f32 %v691_v47, 0.0  ;;  %v1296_v55 = vpop.f32.mrb[25].mxu0  ;;  %v1344_v56 = vpop.f32.mrb[25].mxu1 }
 0x176   : > { %v1176_v57 = vpack.c.bf16 %v721_v51, %v720_v48  ;;  %v1297_v59 = vadd.f32 %v1296_v55, %v1295_v53  ;;  %v1345_v60 = vadd.f32 %v1344_v56, %v1343_v54  ;;  %v1298_v61 = vpop.f32.mrb[26].mxu0  ;;  %v1346_v62 = vpop.f32.mrb[26].mxu1 }
 0x177   : > { %v1216_v58 = vpack.c.bf16 %v737_v52, %v736_v49  ;;  %v1299_v63 = vpop.f32.mrb[27].mxu0  ;;  %v1347_v0 = vpop.f32.mrb[27].mxu1 }
 0x178   : > { %1232 = vst [vmem:[%s1867_s7 + $0x28] sm:$0xff] %v1176_v57   ;;  %v632_v1 = vadd.f32 %v1297_v59, %v1858_v50  ;;  %v696_v2 = vadd.f32 %v1345_v60, %v1858_v50  ;;  %v1300_v3 = vadd.f32 %v1299_v63, %v1298_v61  ;;  %v1348_v4 = vadd.f32 %v1347_v0, %v1346_v62 }
 0x179   : > { %1240 = vst [vmem:[%s1867_s7 + $0x68] sm:$0xff] %v1216_v58  }
 0x17a   : > { %v635_v5 = vadd.f32 %v1300_v3, %v1858_v50  ;;  %v699_v6 = vadd.f32 %v1348_v4, %v1858_v50  ;;  %v722_v7 = vmax.f32 %v632_v1, 0.0  ;;  %v738_v8 = vmax.f32 %v696_v2, 0.0 }
 0x17c   : > { %v723_v9 = vmax.f32 %v635_v5, 0.0  ;;  %v739_v10 = vmax.f32 %v699_v6, 0.0  ;;  %v1301_v11 = vpop.f32.mrb[28].mxu0  ;;  %v1349_v12 = vpop.f32.mrb[28].mxu1 }
 0x17d   : > { %v1302_v13 = vpop.f32.mrb[29].mxu0  ;;  %v1350_v14 = vpop.f32.mrb[29].mxu1 }
 0x17e   : > { %v1181_v15 = vpack.c.bf16 %v723_v9, %v722_v7  ;;  %v1221_v16 = vpack.c.bf16 %v739_v10, %v738_v8  ;;  %v1303_v17 = vadd.f32 %v1302_v13, %v1301_v11  ;;  %v1351_v18 = vadd.f32 %v1350_v14, %v1349_v12  ;;  %v1304_v19 = vpop.f32.mrb[30].mxu0  ;;  %v1352_v20 = vpop.f32.mrb[30].mxu1 }
 0x17f   : > { %v1305_v21 = vpop.f32.mrb[31].mxu0  ;;  %v1353_v22 = vpop.f32.mrb[31].mxu1 }
 0x180   : > { %1233 = vst [vmem:[%s1867_s7 + $0x30] sm:$0xff] %v1181_v15   ;;  %1241 = vst [vmem:[%s1867_s7 + $0x70] sm:$0xff] %v1221_v16   ;;  %v640_v23 = vadd.f32 %v1303_v17, %v1858_v50  ;;  %v704_v24 = vadd.f32 %v1351_v18, %v1858_v50  ;;  %v1306_v25 = vadd.f32 %v1305_v21, %v1304_v19 }
 0x181   : > { %v1354_v26 = vadd.f32 %v1353_v22, %v1352_v20 }
 0x182   : > { %v643_v27 = vadd.f32 %v1306_v25, %v1858_v50  ;;  %v724_v29 = vmax.f32 %v640_v23, 0.0  ;;  %v740_v30 = vmax.f32 %v704_v24, 0.0 }
 0x183   : > { %v707_v28 = vadd.f32 %v1354_v26, %v1858_v50 }
 0x184   : > { %v725_v31 = vmax.f32 %v643_v27, 0.0 }
 0x185   : > { %v741_v32 = vmax.f32 %v707_v28, 0.0 }
 0x186   : > { %v1186_v33 = vpack.c.bf16 %v725_v31, %v724_v29 }
 0x187   : > { %v1226_v34 = vpack.c.bf16 %v741_v32, %v740_v30 }
 0x188   : > { %1234 = vst [vmem:[%s1867_s7 + $0x38] sm:$0xff] %v1186_v33  }
 0x189   : > { %1242 = vst [vmem:[%s1867_s7 + $0x78] sm:$0xff] %v1226_v34  }
 0x18a   : > { %1586 = shalt.err (!%p1583_p5)
}
 0x18b   : > { %s1587_s28 = scalar_lea.hbm %s1916_s18, 2048  ;;  %s1591_s30 = scalar_lea.hbm %s1973_s3, 16384 }
 0x18c   : > { %p1588_p6 = scmp.ne.s32.totalorder %s1916_s18, %s1587_s28  ;;  %p1592_p12 = scmp.lt.u32.totalorder %s1916_s18, %s1973_s3 }
 0x18d   : > { %p1593_p0 = scmp.lt.u32.totalorder %s1591_s30, %s1587_s28  ;;  %p1595_p13 = scmp.lt.u32.totalorder %s1587_s28, %s1916_s18 }
 0x18e   : > { %p1589_p7 = pnand %p1588_p6, %p1985_p4 }
 0x18f   : > { %p1594_p1 = por %p1593_p0, %p1592_p12 }
 0x190   : > { %p1590_p9 = pneg %p1589_p7 }
 0x191   : > { %p1596_p8 = por %p1595_p13, %p1594_p1 }
 0x193   : > { %p1597_p10 = pnand %p1596_p8, %p1590_p9 }
 0x195   : > { %1600 = shalt.err (!%p1597_p10)
}
 0x196   : > { %s1668_s6 = smov 64   ;;  %s1669_s7 = smov 4  }
 0x197   : > { %1379 = dma.vmem_to_hbm [thread:$0]  (%p1985_p4), %s1918_s9, 2048, %s1916_s18, %s1924_s15, %s1668_s6, %s1668_s6, %s1669_s7  }
 0x198 PF: > { %p1396_p11 = scmp.ge.s32.totalorder %s1659_s17, 2  ;;  %s932_s8 = sand.u32 1, %s1639_s12  }
 0x199   : > { %p1986_p2 = scmp.ne.s32.totalorder %s1979_s24, 0  ;;  %s933_s10 = scalar_lea.sflag [#allocation4], %s932_s8 }
 0x19b   : > { %p1389_p3 = pnand %p1396_p11, %p1986_p2 }
 0x19d   : > { %1634 = dma.done.wait (!%p1389_p3), %s933_s10, 2048  }
 0x19e   : > { %1636 = vsyncadd (!%p1389_p3), %s933_s10, 4294965248  ;;  %s18_s17 = sadd.s32 1, %s1659_s17   ;;  %s1987_s12 = smov %s1643_s13 }
 0x19f   : > { %p15_p5 = scmp.ge.s32.totalorder %s18_s17, 10   ;;  %s1988_s13 = smov %s1647_s14 }
 0x1a0   : > { %s1989_s14 = smov %s1743_s25  ;;  %s1990_s15 = smov %s1655_s16 }
 0x1a1   : > { %s1991_s16 = smov %s1993_s20  ;;  %17 = sbr.rel (!%p15_p5) target bundleno = 6 (0x6), region = 78 }
 0x1a8   :  { %938 = vsyncpa [#allocation3], 1 }
 0x1a9   :  { %940 = vsyncpa [#allocation3 + $0x1], 1 }
 0x1aa   :  { %941 = vsyncpa [#allocation6], 1 }
 0x1ab   :  { %942 = vsyncpa [#allocation4], 1 }
 0x1ac   :  { %944 = vsyncpa [#allocation4 + $0x1], 1 }

</bundles_post_ra>
